<compile_context>
chip_gen: v7x
topology: tpu7x:2x2x1
jax: 0.10.0
libtpu: 0.0.40
codegen_flags: <defaults>
</compile_context>

<pallas_src>
import jax
import jax.numpy as jnp
from jax.experimental import pallas as pl
from jax.experimental.pallas import tpu as pltpu


def _kl_distill_kernel(inv_temp_ref, x_ref, y_ref, kl_ref):
    """Per-row KL(teacher || student) for one (tile_b, C) tile of logits.

    inv_temp_ref : SMEM (1,)  f32  -> [1/T] runtime scalar (no recompile on T change)
    x_ref, y_ref : VMEM (tile_b, C) student / teacher logits (any float dtype)
    kl_ref       : VMEM (tile_b, 1) f32 per-row KL divergence (unscaled)
    """
    inv_temp = inv_temp_ref[0]

    # All math in f32 (v5e has no bf16 VPU/EUP; harmless on v6e/v7x).
    x = x_ref[...].astype(jnp.float32) * inv_temp
    y = y_ref[...].astype(jnp.float32) * inv_temp

    # Row-wise max-shift for numerical stability (softmax axis = last axis).
    x_sh = x - jnp.max(x, axis=1, keepdims=True)
    lse_x = jnp.log(jnp.sum(jnp.exp(x_sh), axis=1, keepdims=True))

    y_sh = y - jnp.max(y, axis=1, keepdims=True)
    ey = jnp.exp(y_sh)
    sum_ey = jnp.sum(ey, axis=1, keepdims=True)

    # kl_row = sum_c ey*(y_sh - x_sh) / sum_ey - (log(sum_ey) - lse_x)
    num = jnp.sum(ey * (y_sh - x_sh), axis=1, keepdims=True)
    kl_ref[...] = num * pl.reciprocal(sum_ey, approx=False) - (jnp.log(sum_ey) - lse_x)
    # Padded rows of a partial last tile produce garbage here, but their
    # out-of-bounds stores are discarded and they never enter the cross-row
    # reduction (done in the wrapper over exactly B rows).


def _vmem_capacity_bytes():
    try:
        info = pltpu.get_tpu_info()
        cap = getattr(info, "vmem_capacity_bytes", None)
        if cap:
            return int(cap)
    except Exception:
        pass
    return 64 << 20  # conservative fallback: v7x per-TensorCore VMEM


def _pick_tile_b(batch, classes, in_bytes, sublane, vmem_cap):
    # Budget ~half of physical VMEM for this kernel's working set.
    # Per-row footprint: 2 inputs x 2 pipeline buffers x in_bytes
    # + ~5 live f32 row-wide temporaries (x_sh, exp(x_sh), y_sh, ey, ey*(y_sh-x_sh)).
    budget = vmem_cap // 2
    bytes_per_row = classes * (2 * 2 * in_bytes + 5 * 4)
    tile_b = budget // max(bytes_per_row, 1)
    tile_b = (tile_b // sublane) * sublane
    tile_b = int(max(sublane, min(tile_b, 1024)))  # >=~512-row tiles ~85% of roofline
    if tile_b >= batch:
        tile_b = batch  # whole batch in one tile (block == full dims is allowed)
    return tile_b


def distillation_loss(x, y, temp, *, tile_b=None):
    """KL distillation loss (batchmean * T^2) for [B, C] logits; returns scalar f32.

    For realistic sizes pass bf16 logits (cast in the caller): the kernel is
    HBM-bound and upcasts to f32 internally, so this halves traffic for free.
    """
    assert x.shape == y.shape and x.ndim == 2 and x.dtype == y.dtype
    B, C = x.shape
    in_bytes = jnp.dtype(x.dtype).itemsize
    sublane = 16 if in_bytes == 2 else 8  # bf16 packs 2 rows per sublane

    vmem_cap = _vmem_capacity_bytes()
    if tile_b is None:
        tile_b = _pick_tile_b(B, C, in_bytes, sublane, vmem_cap)
    assert tile_b == B or tile_b % sublane == 0, (tile_b, B, sublane)

    num_tiles = pl.cdiv(B, tile_b)

    # Runtime scalar in SMEM -> one compiled kernel for any temperature value.
    temp = jnp.float32(temp)
    inv_temp = jnp.reshape(1.0 / temp, (1,))

    # Explicit VMEM limit: input double-buffers + f32 temporaries + headroom,
    # well above the 16 MiB v5e default scoped limit, capped below physical.
    needed = 2 * 2 * tile_b * C * in_bytes + 6 * tile_b * C * 4 + (1 << 20)
    vmem_limit = int(min(max(needed, 32 << 20), int(vmem_cap * 0.9)))

    cost = pl.CostEstimate(
        flops=int(12 * B * C),
        transcendentals=int(2 * B * C + 4 * B),
        bytes_accessed=int(2 * B * C * in_bytes + B * 4),
    )

    row_kl = pl.pallas_call(
        _kl_distill_kernel,
        out_shape=jax.ShapeDtypeStruct((B, 1), jnp.float32),
        grid=(num_tiles,),
        in_specs=[
            pl.BlockSpec(memory_space=pltpu.MemorySpace.SMEM),  # [1/T]
            pl.BlockSpec((tile_b, C), lambda i: (i, 0)),        # student logits tile
            pl.BlockSpec((tile_b, C), lambda i: (i, 0)),        # teacher logits tile
        ],
        out_specs=pl.BlockSpec((tile_b, 1), lambda i: (i, 0)),
        compiler_params=pltpu.CompilerParams(
            # Row tiles are independent -> both v7x TensorCores can split the grid.
            dimension_semantics=("parallel",),
            vmem_limit_bytes=vmem_limit,
        ),
        cost_estimate=cost,
    )(inv_temp, x, y)

    # batchmean + T^2 scaling outside the kernel (runtime scalars, fused by XLA).
    return jnp.sum(row_kl) * (temp * temp / jnp.float32(B))


def _reference_loss(x, y, temp):
    # Pure-JAX reference mirroring the PyTorch module (f32 math).
    xf = x.astype(jnp.float32)
    yf = y.astype(jnp.float32)
    student = jax.nn.log_softmax(xf / temp, axis=1)
    teacher = jax.nn.softmax(yf / temp, axis=1)
    kl = jnp.sum(teacher * (jnp.log(teacher) - student)) / x.shape[0]
    return kl * temp * temp


if __name__ == "__main__":
    key = jax.random.PRNGKey(0)
    kx, ky, kx2, ky2 = jax.random.split(key, 4)

    # Case 1: f32 logits, explicit small row tile -> multi-tile grid with a
    # partial last tile (B=20, tile_b=8 -> grid=(3,)).
    B, C, temp = 20, 128, 4.0
    x = jax.random.normal(kx, (B, C), dtype=jnp.float32)
    y = jax.random.normal(ky, (B, C), dtype=jnp.float32)
    loss = distillation_loss(x, y, temp, tile_b=8)
    jax.block_until_ready(loss)
    ref = _reference_loss(x, y, temp)
    assert jnp.allclose(loss, ref, rtol=1e-5, atol=1e-5), (loss, ref)

    # Case 2: bf16 logits (recommended bandwidth-saving path), auto tile_b.
    B2, C2, temp2 = 32, 256, 2.5
    x2 = jax.random.normal(kx2, (B2, C2), dtype=jnp.float32).astype(jnp.bfloat16)
    y2 = jax.random.normal(ky2, (B2, C2), dtype=jnp.float32).astype(jnp.bfloat16)
    loss2 = distillation_loss(x2, y2, temp2)
    jax.block_until_ready(loss2)
    ref2 = _reference_loss(x2, y2, temp2)  # same bf16 inputs, f32 reference math
    assert jnp.allclose(loss2, ref2, rtol=1e-4, atol=1e-4), (loss2, ref2)

    print("KERNEL_OK")
</pallas_src>

<mosaic_0001>
module attributes {stable_mosaic.version = 11 : i64} {
  func.func @_kl_distill_kernel(%arg0: i32, %arg1: memref<1xf32, #tpu.memory_space<smem>>, %arg2: memref<8x128xf32, #tpu.memory_space<vmem>>, %arg3: memref<8x128xf32, #tpu.memory_space<vmem>>, %arg4: memref<8x1xf32, #tpu.memory_space<vmem>>) attributes {dimension_semantics = [#tpu.dimension_semantics<parallel>], iteration_bounds = array<i64: 3>, scalar_prefetch = 0 : i64, scratch_operands = 0 : i64, tpu.core_type = #tpu.core_type<tc>, window_params = [{transform_indices = @transform_0, window_bounds = array<i64: 1>}, {transform_indices = @transform_1, window_bounds = array<i64: 8, 128>}, {transform_indices = @transform_2, window_bounds = array<i64: 8, 128>}, {transform_indices = @transform_3, window_bounds = array<i64: 8, 1>}]} {
    %c0 = arith.constant 0 : index
    %0 = memref.load %arg1[%c0] : memref<1xf32, #tpu.memory_space<smem>>
    %c0_0 = arith.constant 0 : index
    %c0_1 = arith.constant 0 : index
    %1 = vector.load %arg2[%c0_0, %c0_1] : memref<8x128xf32, #tpu.memory_space<vmem>>, vector<8x128xf32>
    %2 = vector.broadcast %0 : f32 to vector<8x128xf32>
    %3 = arith.mulf %1, %2 : vector<8x128xf32>
    %c0_2 = arith.constant 0 : index
    %c0_3 = arith.constant 0 : index
    %4 = vector.load %arg3[%c0_2, %c0_3] : memref<8x128xf32, #tpu.memory_space<vmem>>, vector<8x128xf32>
    %5 = vector.broadcast %0 : f32 to vector<8x128xf32>
    %6 = arith.mulf %4, %5 : vector<8x128xf32>
    %cst = arith.constant dense<0xFF800000> : vector<8xf32>
    %7 = vector.multi_reduction <maximumf>, %3, %cst [1] : vector<8x128xf32> to vector<8xf32>
    %8 = vector.shape_cast %7 : vector<8xf32> to vector<8x1xf32>
    %9 = vector.broadcast %8 : vector<8x1xf32> to vector<8x128xf32>
    %10 = arith.subf %3, %9 : vector<8x128xf32>
    %11 = math.exp %10 : vector<8x128xf32>
    %cst_4 = arith.constant dense<0.000000e+00> : vector<8xf32>
    %12 = vector.multi_reduction <add>, %11, %cst_4 [1] : vector<8x128xf32> to vector<8xf32>
    %13 = vector.shape_cast %12 : vector<8xf32> to vector<8x1xf32>
    %14 = math.log %13 : vector<8x1xf32>
    %cst_5 = arith.constant dense<0xFF800000> : vector<8xf32>
    %15 = vector.multi_reduction <maximumf>, %6, %cst_5 [1] : vector<8x128xf32> to vector<8xf32>
    %16 = vector.shape_cast %15 : vector<8xf32> to vector<8x1xf32>
    %17 = vector.broadcast %16 : vector<8x1xf32> to vector<8x128xf32>
    %18 = arith.subf %6, %17 : vector<8x128xf32>
    %19 = math.exp %18 : vector<8x128xf32>
    %cst_6 = arith.constant dense<0.000000e+00> : vector<8xf32>
    %20 = vector.multi_reduction <add>, %19, %cst_6 [1] : vector<8x128xf32> to vector<8xf32>
    %21 = vector.shape_cast %20 : vector<8xf32> to vector<8x1xf32>
    %22 = arith.subf %18, %10 : vector<8x128xf32>
    %23 = arith.mulf %19, %22 : vector<8x128xf32>
    %cst_7 = arith.constant dense<0.000000e+00> : vector<8xf32>
    %24 = vector.multi_reduction <add>, %23, %cst_7 [1] : vector<8x128xf32> to vector<8xf32>
    %25 = vector.shape_cast %24 : vector<8xf32> to vector<8x1xf32>
    %26 = tpu.reciprocal %21 : vector<8x1xf32> -> vector<8x1xf32>
    %27 = arith.mulf %25, %26 : vector<8x1xf32>
    %28 = math.log %21 : vector<8x1xf32>
    %29 = arith.subf %28, %14 : vector<8x1xf32>
    %30 = arith.subf %27, %29 : vector<8x1xf32>
    %c0_8 = arith.constant 0 : index
    %c0_9 = arith.constant 0 : index
    %31 = vector.load %arg4[%c0_8, %c0_9] : memref<8x1xf32, #tpu.memory_space<vmem>>, vector<8x1xf32>
    tpu.vector_store %arg4[%c0_8, %c0_9], %30 {strides = array<i32>} : memref<8x1xf32, #tpu.memory_space<vmem>>, vector<8x1xf32>,
    return
  }
  func.func @transform_0(%arg0: i32) -> i32 {
    %c0_i32 = arith.constant 0 : i32
    %c0_i32_0 = arith.constant 0 : i32
    return %c0_i32 : i32
  }
  func.func @transform_1(%arg0: i32) -> (i32, i32) {
    %c0_i32 = arith.constant 0 : i32
    %c0_i32_0 = arith.constant 0 : i32
    return %arg0, %c0_i32 : i32, i32
  }
  func.func @transform_2(%arg0: i32) -> (i32, i32) {
    %c0_i32 = arith.constant 0 : i32
    %c0_i32_0 = arith.constant 0 : i32
    return %arg0, %c0_i32 : i32, i32
  }
  func.func @transform_3(%arg0: i32) -> (i32, i32) {
    %c0_i32 = arith.constant 0 : i32
    %c0_i32_0 = arith.constant 0 : i32
    return %arg0, %c0_i32 : i32, i32
  }
}

</mosaic_0001>

<bundles_post_ra>
// kernel: tpu_custom_call.1
= control target key start
LH: loop header
LB: loop body
LE: loop exit
PB: predicated region body
PF: predicated region fallthrough
CT: control target
= control target key end

     0   :  { %s692_s0 = inlined_call_operand.<no memory space> [shape: f32[1], index: 0, kind: input, shape index: {}]   ;;  %s693_s1 = inlined_call_operand.hbm [shape: f32[20,128], index: 1, kind: input, shape index: {}]   ;;  %s694_s2 = inlined_call_operand.hbm [shape: f32[20,128], index: 2, kind: input, shape index: {}]   ;;  %s695_s3 = inlined_call_operand.vmem [shape: f32[20,1], index: 3, kind: output, shape index: {}]  }
   0x1   :  { %8 = sst [smem:[#allocation2]] %s692_s0 }
   0x2   :  { %9 = vsyncpa [#allocation4], 0 }
   0x3   :  { %11 = vsyncpa [#allocation4 + $0x1], 0 }
   0x4   :  { %12 = vsyncpa [#allocation6], 0 }
   0x5   :  { %14 = vsyncpa [#allocation6 + $0x1], 0  ;;  %s538_s14 = smov 0   ;;  %s540_s15 = smov 0  }
   0x6   :  { %s542_s16 = smov 0   ;;  %s544_s17 = smov 0  }
   0x7 LB: > { %s557_s0 = sadd.s32 4294967295, %s511_s17   ;;  %s560_s18 = sadd.s32 1, %s511_s17   ;;  %s511_s17 = sphi %s544_s17, %s707_s17   ;;  %s507_s16 = sphi %s542_s16, %s706_s16   ;;  %s503_s15 = sphi %s540_s15, %s705_s15   ;;  %s499_s14 = sphi %s538_s14, %s704_s14  }
   0x8   : > { %s45_s19 = ssub.s32 %s511_s17, %s560_s18  ;;  %s48_s20 = sadd.s32 1, %s507_s16 }
   0x9   : > { %p46_p0 = scmp.eq.s32.totalorder %s45_s19, 0  ;;  %p55_p1 = scmp.ne.s32.totalorder %s507_s16, %s503_s15 }
   0xa   : > { %p56_p2 = scmp.eq.s32.totalorder %s511_s17, 0  ;;  %p61_p3 = scmp.ne.s32.totalorder %s503_s15, %s499_s14 }
   0xb   : > { %s570_s21 = scalar_select %p46_p0, %s507_s16, %s48_s20  }
   0xc   : > { %p57_p4 = por %p56_p2, %p55_p1  ;;  %p62_p5 = scmp.eq.s32.totalorder %s557_s0, 0 }
   0xd   : > { %p370_p6 = scmp.lt.s32.totalorder %s511_s17, 3  ;;  %s579_s23 = sand.u32 1, %s507_s16  }
   0xe   : > { %p574_p7 = por %p62_p5, %p61_p3  ;;  %s349_s24 = sshll.u32 %s579_s23, 3 }
   0xf   : > { %s350_s25 = sshll.u32 %s511_s17, 7  ;;  %s144_s29 = scalar_lea.vmem [#allocation3], %s349_s24 }
  0x10   : > { %s697_s22 = scalar_select %p574_p7, 1, 0 }
  0x11   : > { %s588_s28 = scalar_lea.hbm %s693_s1, %s350_s25  ;;  %s151_s30 = sshll.u32 %s144_s29, 4  ;;  %s592_s30 = int_to_ptr.vmem [resolvable:$true] %s151_s30 }
  0x12   : > { %p594_p8 = pnand %p370_p6, %p57_p4  ;;  %s141_s5 = scalar_lea.sflag [#allocation4], %s579_s23 }
  0x13   : > { %s413_s6 = scalar_lea.hbm %s588_s28, 128  ;;  %s418_s9 = scalar_lea.hbm %s693_s1, 384 }
  0x14   : > { %p414_p11 = scmp.ne.s32.totalorder %s588_s28, %s413_s6  ;;  %p415_p12 = pneg %p594_p8 }
  0x15   : > { %p419_p1 = scmp.lt.u32.totalorder %s588_s28, %s693_s1  ;;  %p420_p2 = scmp.lt.u32.totalorder %s418_s9, %s413_s6 }
  0x16   : > { %p416_p13 = pnand %p415_p12, %p414_p11  ;;  %p422_p4 = scmp.lt.u32.totalorder %s413_s6, %s588_s28 }
  0x17   : > { %p421_p3 = por %p420_p2, %p419_p1 }
  0x18   : > { %p417_p0 = pneg %p416_p13 }
  0x19   : > { %p423_p5 = por %p422_p4, %p421_p3 }
  0x1b   : > { %p424_p6 = pnand %p423_p5, %p417_p0 }
  0x1d   : > { %427 = shalt.err (!%p424_p6)
}
  0x1e   : > { %s428_s12 = scalar_lea.vmem %s592_s30, 128  ;;  %s513_s13 = smov [#allocation3]  }
  0x1f   : > { %p429_p11 = scmp.ne.s32.totalorder %s592_s30, %s428_s12  ;;  %s433_s14 = sshll.u32 %s513_s13, 4  ;;  %s434_s14 = int_to_ptr.vmem [resolvable:$false] %s433_s14 }
  0x20   : > { %s435_s19 = scalar_lea.vmem %s434_s14, 256  ;;  %p436_p10 = scmp.lt.s32.totalorder %s592_s30, %s434_s14 }
  0x21   : > { %p431_p13 = pnand %p429_p11, %p415_p12  ;;  %p437_p1 = scmp.lt.s32.totalorder %s435_s19, %s428_s12 }
  0x23   : > { %p432_p9 = pneg %p431_p13  ;;  %p438_p2 = por %p437_p1, %p436_p10 }
  0x25   : > { %p439_p3 = pnand %p438_p2, %p432_p9 }
  0x27   : > { %442 = shalt.err (!%p439_p3)
}
  0x28   : > { %366 = dma.hbm_to_vmem [thread:$0]  (!%p594_p8), %s588_s28, 128, %s592_s30, %s141_s5  }
  0x29   : > { %p699_p0 = scmp.lt.s32.totalorder %s511_s17, 4  ;;  %p700_p4 = scmp.ge.s32.totalorder %s511_s17, 1 }
  0x2a   : > { %s639_s29 = scalar_lea.hbm %s694_s2, %s350_s25  ;;  %s162_s6 = scalar_lea.vmem [#allocation5], %s349_s24 }
  0x2b   : > { %p630_p5 = pnand %p700_p4, %p699_p0  ;;  %s169_s7 = sshll.u32 %s162_s6, 4  ;;  %s170_s7 = int_to_ptr.vmem [resolvable:$true] %s169_s7 }
  0x2c   : > { %s159_s28 = scalar_lea.sflag [#allocation6], %s579_s23  ;;  %s443_s30 = scalar_lea.hbm %s639_s29, 128 }
  0x2d   : > { %s701_s20 = scalar_select %p630_p5, 1, 0 }
  0x2e   : > { %p444_p9 = scmp.ne.s32.totalorder %s639_s29, %s443_s30  ;;  %s448_s25 = scalar_lea.hbm %s694_s2, 384 }
  0x2f   : > { %p449_p11 = scmp.lt.u32.totalorder %s639_s29, %s694_s2  ;;  %p450_p13 = scmp.lt.u32.totalorder %s448_s25, %s443_s30 }
  0x30   : > { %p446_p10 = pnand %p444_p9, %p415_p12  ;;  %p452_p2 = scmp.lt.u32.totalorder %s443_s30, %s639_s29 }
  0x31   : > { %p451_p1 = por %p450_p13, %p449_p11 }
  0x32   : > { %p447_p6 = pneg %p446_p10 }
  0x33   : > { %p453_p3 = por %p452_p2, %p451_p1 }
  0x35   : > { %p454_p0 = pnand %p453_p3, %p447_p6 }
  0x37   : > { %457 = shalt.err (!%p454_p0)
}
  0x38   : > { %s458_s23 = scalar_lea.vmem %s170_s7, 128  ;;  %s514_s24 = smov [#allocation5]  }
  0x39   : > { %p459_p4 = scmp.ne.s32.totalorder %s170_s7, %s458_s23  ;;  %s463_s10 = sshll.u32 %s514_s24, 4  ;;  %s464_s10 = int_to_ptr.vmem [resolvable:$false] %s463_s10 }
  0x3a   : > { %s465_s11 = scalar_lea.vmem %s464_s10, 256  ;;  %p466_p7 = scmp.lt.s32.totalorder %s170_s7, %s464_s10 }
  0x3b   : > { %p461_p9 = pnand %p459_p4, %p415_p12  ;;  %p467_p5 = scmp.lt.s32.totalorder %s465_s11, %s458_s23 }
  0x3d   : > { %p462_p10 = pneg %p461_p9  ;;  %p468_p11 = por %p467_p5, %p466_p7 }
  0x3f   : > { %p469_p13 = pnand %p468_p11, %p462_p10 }
  0x41   : > { %472 = shalt.err (!%p469_p13)
}
  0x42   : > { %369 = dma.hbm_to_vmem [thread:$0]  (!%p594_p8), %s639_s29, 128, %s170_s7, %s159_s28  }
  0x43   : > { %p702_p6 = scmp.ne.s32.totalorder %s701_s20, 0 }
  0x44   : > { %s180_s12 = sand.u32 (!%p702_p6), 1, %s503_s15   ;;  %p703_p12 = scmp.ne.s32.totalorder (!%p702_p6), %s697_s22, 0 }
  0x45   : > { %178 = sbr.rel (%p702_p6) target bundleno = 410 (0x19a), region = 32  ;;  %s354_s13 = sshll.u32 (!%p702_p6), %s180_s12, 3 }
  0x46   : > { %s181_s14 = scalar_lea.sflag (!%p702_p6), [#allocation4], %s180_s12  ;;  %s184_s19 = scalar_lea.vmem (!%p702_p6), [#allocation3], %s354_s13 }
  0x4c   : > { %490 = dma.done.wait (%p703_p12), %s181_s14, 128  }
  0x4d   : > { %492 = vsyncadd (%p703_p12), %s181_s14, 4294967168  ;;  %s190_s26 = scalar_lea.sflag [#allocation6], %s180_s12  ;;  %s193_s27 = scalar_lea.vmem [#allocation5], %s354_s13 }
  0x4e   : > { %494 = dma.done.wait (%p703_p12), %s190_s26, 128  }
  0x4f   : > { %496 = vsyncadd (%p703_p12), %s190_s26, 4294967168  ;;  %s224_s4 = sld [smem:[#allocation2]]  ;;  %v225_v0 = vld [vmem:[%s184_s19] sm:$0xff]  ;;  %v228_v2 = vld [vmem:[%s193_s27] sm:$0xff]  ;;  %p220_p7 = scmp.lt.s32.totalorder %s557_s0, 2  ;;  %vm256_vm0 = vcmask 7168  }
  0x51   : > { %s709_s0 = smov (!%p220_p7, %s557_s0), 2 }
  0x52   : > { %s356_s22 = sshll.u32 %s709_s0, 3 }
  0x53   : > { %s223_s6 = scalar_lea.vmem %s695_s3, %s356_s22 }
  0x55   : > { %v226_v1 = vstv %s224_s4 }
  0x56   : > { %v227_v3 = vmul.f32 %v226_v1, %v225_v0  ;;  %v229_v4 = vmul.f32 %v228_v2, %v226_v1 }
  0x58   : > { %230 = vmax.xlane.f32.xlu0 %v227_v3 }
  0x5c   : > { %239 = vmax.xlane.f32.xlu0 %v229_v4 }
  0xe5   : > { %v231_v5 = vpop.xlane.xlu0 %230 }
  0xe6   : > { %v232_v6 = vsub.f32 %v227_v3, %v231_v5 }
  0xe8   : > { %v233_v7 = vmul.f32 1.442695, %v232_v6 }
  0xe9   : > { %v240_v8 = vpop.xlane.xlu0 %239 }
  0xea   : > { %v241_v9 = vsub.f32 %v229_v4, %v240_v8  ;;  %403 = vpow2.f32 %v233_v7 }
  0xec   : > { %v242_v10 = vmul.f32 1.442695, %v241_v9  ;;  %v246_v12 = vsub.f32 %v241_v9, %v232_v6 }
  0xee   : > { %405 = vpow2.f32 %v242_v10 }
  0xf4   : > { %v404_v11 = vpop.eup %403 }
  0xf5   : > { %235 = vadd.xlane.f32.xlu1 %v404_v11 }
  0xf8   : > { %v406_v13 = vpop.eup %405 }
  0xf9   : > { %244 = vadd.xlane.f32.xlu1 %v406_v13  ;;  %v247_v14 = vmul.f32 %v406_v13, %v246_v12 }
  0xfb   : > { %248 = vadd.xlane.f32.xlu0 %v247_v14 }
 0x182   : > { %v236_v15 = vpop.xlane.xlu1 %235 }
 0x183   : > { %407 = vlog2.f32 %v236_v15 }
 0x186   : > { %v245_v16 = vpop.xlane.xlu1 %244 }
 0x187   : > { %409 = vrcp.f32 %v245_v16 }
 0x188   : > { %411 = vlog2.f32 %v245_v16  ;;  %v249_v22 = vpop.xlane.xlu0 %248 }
 0x18d   : > { %v408_v17 = vpop.eup %407 }
 0x18e   : > { %v238_v20 = vmul.f32 0.6931472, %v408_v17 }
 0x191   : > { %v410_v18 = vpop.eup %409 }
 0x192   : > { %v412_v19 = vpop.eup %411  ;;  %v251_v24 = vmul.f32 %v410_v18, %v249_v22 }
 0x193   : > { %v253_v21 = vmul.f32 0.6931472, %v412_v19 }
 0x195   : > { %v254_v23 = vsub.f32 %v253_v21, %v238_v20 }
 0x197   : > { %v255_v25 = vsub.f32 %v251_v24, %v254_v23 }
 0x199   : > { %257 = vst.msk [vmem:[%s223_s6] sm:$0xff] %vm256_vm0, %v255_v25 }
 0x19a PF: > { %p17_p8 = scmp.ge.s32.totalorder %s560_s18, 5   ;;  %s704_s14 = smov %s503_s15 }
 0x19b   : > { %s705_s15 = smov %s507_s16  ;;  %s706_s16 = smov %s570_s21 }
 0x19c   : > { %s707_s17 = smov %s560_s18  ;;  %19 = sbr.rel (!%p17_p8) target bundleno = 7 (0x7), region = 85 }
 0x1a3   :  { %277 = vsyncpa [#allocation4], 1 }
 0x1a4   :  { %279 = vsyncpa [#allocation4 + $0x1], 1 }
 0x1a5   :  { %280 = vsyncpa [#allocation6], 1 }
 0x1a6   :  { %282 = vsyncpa [#allocation6 + $0x1], 1 }

</bundles_post_ra>
